<compile_context>
chip_gen: v7x
topology: tpu7x:2x2x1
jax: 0.10.0
libtpu: 0.0.40
codegen_flags: <defaults>
</compile_context>

<pallas_src>
import jax
import jax.numpy as jnp
from jax.experimental import pallas as pl
from jax.experimental.pallas import tpu as pltpu


def _triplet_kernel(x1_ref, x2_ref, x3_ref, w1_ref, b1_ref, w2_ref, b2_ref,
                    o1_ref, o2_ref, o3_ref):
    # x*_ref: (B, D) f32   w1_ref: (D, H) f32   b1_ref: (1, H) f32
    # w2_ref: (H, E) f32   b2_ref: (1, E) f32   o*_ref: (B, E) f32
    w1 = w1_ref[...]
    b1 = b1_ref[...]
    w2 = w2_ref[...]
    b2 = b2_ref[...]

    def embed(x):
        h = jnp.dot(x, w1, preferred_element_type=jnp.float32) + b1
        h = jnp.maximum(h, 0.0)                       # ReLU (f32 VPU)
        return jnp.dot(h, w2, preferred_element_type=jnp.float32) + b2

    o1_ref[...] = embed(x1_ref[...]).astype(o1_ref.dtype)
    o2_ref[...] = embed(x2_ref[...]).astype(o2_ref.dtype)
    o3_ref[...] = embed(x3_ref[...]).astype(o3_ref.dtype)


def _triplet_net_forward(x1, x2, x3, params):
    """Applies the shared embedding net to x1, x2, x3 (NCHW); one pallas_call."""
    w1, b1, w2, b2 = params
    B = x1.shape[0]
    D = w1.shape[0]
    H = w1.shape[1]
    E = w2.shape[1]

    # Flatten NCHW -> (B, D).  Contiguous row-major: metadata-only under XLA.
    x1f = x1.reshape(B, D)
    x2f = x2.reshape(B, D)
    x3f = x3.reshape(B, D)

    def full_spec(shape):
        # Block == full array (single grid step); satisfies the (8,128) rule
        # via the full-extent escape hatch.
        return pl.BlockSpec(shape, lambda i, _s=shape: (0,) * len(_s))

    out_sds = jax.ShapeDtypeStruct((B, E), jnp.float32)
    o1, o2, o3 = pl.pallas_call(
        _triplet_kernel,
        out_shape=(out_sds, out_sds, out_sds),
        grid_spec=pltpu.PrefetchScalarGridSpec(
            num_scalar_prefetch=0,
            grid=(1,),
            in_specs=[
                full_spec((B, D)), full_spec((B, D)), full_spec((B, D)),
                full_spec((D, H)), full_spec((1, H)),
                full_spec((H, E)), full_spec((1, E)),
            ],
            out_specs=[full_spec((B, E)), full_spec((B, E)), full_spec((B, E))],
        ),
        compiler_params=pltpu.CompilerParams(
            dimension_semantics=("arbitrary",),
        ),
    )(x1f, x2f, x3f, w1, b1, w2, b2)

    # Mirrors TripletNet.forward's (output1, output2, output3) tuple directly
    # (no wrapper-side slicing).
    return o1, o2, o3


triplet_net_forward = jax.jit(_triplet_net_forward)


def _reference_embedding(x, params):
    # Pure-JAX f32 reference of the same embedding net.
    w1, b1, w2, b2 = params
    xf = x.reshape(x.shape[0], -1)
    h = jnp.maximum(jnp.dot(xf, w1) + b1, 0.0)
    return jnp.dot(h, w2) + b2


if __name__ == "__main__":
    key = jax.random.PRNGKey(0)
    k_x1, k_x2, k_x3, k_w1, k_b1, k_w2, k_b2 = jax.random.split(key, 7)

    # Small shapes consistent with an image-triplet setup.
    B, C, Himg, Wimg = 2, 4, 16, 16
    D = C * Himg * Wimg      # 1024
    H = 128                  # hidden
    E = 32                   # embedding dim

    x1 = jax.random.normal(k_x1, (B, C, Himg, Wimg), dtype=jnp.float32)
    x2 = jax.random.normal(k_x2, (B, C, Himg, Wimg), dtype=jnp.float32)
    x3 = jax.random.normal(k_x3, (B, C, Himg, Wimg), dtype=jnp.float32)

    # Deterministic parameter init (shared embedding net), stored once in f32;
    # no per-call casts anywhere.
    w1 = jax.random.normal(k_w1, (D, H), dtype=jnp.float32) * (1.0 / D) ** 0.5
    b1 = jax.random.normal(k_b1, (1, H), dtype=jnp.float32) * 0.01
    w2 = jax.random.normal(k_w2, (H, E), dtype=jnp.float32) * (1.0 / H) ** 0.5
    b2 = jax.random.normal(k_b2, (1, E), dtype=jnp.float32) * 0.01
    params = (w1, b1, w2, b2)

    o1, o2, o3 = triplet_net_forward(x1, x2, x3, params)
    jax.block_until_ready((o1, o2, o3))

    # Sanity check against a pure-JAX f32 reference of the same embedding net.
    r1 = _reference_embedding(x1, params)
    r2 = _reference_embedding(x2, params)
    r3 = _reference_embedding(x3, params)
    assert o1.shape == (B, E) and o2.shape == (B, E) and o3.shape == (B, E)
    assert jnp.allclose(o1, r1, atol=2e-2, rtol=2e-2)
    assert jnp.allclose(o2, r2, atol=2e-2, rtol=2e-2)
    assert jnp.allclose(o3, r3, atol=2e-2, rtol=2e-2)

    print("KERNEL_OK")
</pallas_src>

<mosaic_0001>
module attributes {stable_mosaic.version = 11 : i64} {
  func.func @_triplet_kernel(%arg0: i32, %arg1: memref<2x1024xf32, #tpu.memory_space<vmem>>, %arg2: memref<2x1024xf32, #tpu.memory_space<vmem>>, %arg3: memref<2x1024xf32, #tpu.memory_space<vmem>>, %arg4: memref<1024x128xf32, #tpu.memory_space<vmem>>, %arg5: memref<1x128xf32, #tpu.memory_space<vmem>>, %arg6: memref<128x32xf32, #tpu.memory_space<vmem>>, %arg7: memref<1x32xf32, #tpu.memory_space<vmem>>, %arg8: memref<2x32xf32, #tpu.memory_space<vmem>>, %arg9: memref<2x32xf32, #tpu.memory_space<vmem>>, %arg10: memref<2x32xf32, #tpu.memory_space<vmem>>) attributes {dimension_semantics = [#tpu.dimension_semantics<arbitrary>], iteration_bounds = array<i64: 1>, scalar_prefetch = 0 : i64, scratch_operands = 0 : i64, tpu.core_type = #tpu.core_type<tc>, window_params = [{pipeline_mode = #tpu.pipeline_mode<synchronous>, transform_indices = @transform_0, window_bounds = array<i64: 2, 1024>}, {pipeline_mode = #tpu.pipeline_mode<synchronous>, transform_indices = @transform_1, window_bounds = array<i64: 2, 1024>}, {pipeline_mode = #tpu.pipeline_mode<synchronous>, transform_indices = @transform_2, window_bounds = array<i64: 2, 1024>}, {pipeline_mode = #tpu.pipeline_mode<synchronous>, transform_indices = @transform_3, window_bounds = array<i64: 1024, 128>}, {pipeline_mode = #tpu.pipeline_mode<synchronous>, transform_indices = @transform_4, window_bounds = array<i64: 1, 128>}, {pipeline_mode = #tpu.pipeline_mode<synchronous>, transform_indices = @transform_5, window_bounds = array<i64: 128, 32>}, {pipeline_mode = #tpu.pipeline_mode<synchronous>, transform_indices = @transform_6, window_bounds = array<i64: 1, 32>}, {pipeline_mode = #tpu.pipeline_mode<synchronous>, transform_indices = @transform_7, window_bounds = array<i64: 2, 32>}, {pipeline_mode = #tpu.pipeline_mode<synchronous>, transform_indices = @transform_8, window_bounds = array<i64: 2, 32>}, {pipeline_mode = #tpu.pipeline_mode<synchronous>, transform_indices = @transform_9, window_bounds = array<i64: 2, 32>}]} {
    %c0 = arith.constant 0 : index
    %c0_0 = arith.constant 0 : index
    %0 = vector.load %arg4[%c0, %c0_0] : memref<1024x128xf32, #tpu.memory_space<vmem>>, vector<1024x128xf32>
    %c0_1 = arith.constant 0 : index
    %c0_2 = arith.constant 0 : index
    %1 = vector.load %arg5[%c0_1, %c0_2] : memref<1x128xf32, #tpu.memory_space<vmem>>, vector<1x128xf32>
    %c0_3 = arith.constant 0 : index
    %c0_4 = arith.constant 0 : index
    %2 = vector.load %arg6[%c0_3, %c0_4] : memref<128x32xf32, #tpu.memory_space<vmem>>, vector<128x32xf32>
    %c0_5 = arith.constant 0 : index
    %c0_6 = arith.constant 0 : index
    %3 = vector.load %arg7[%c0_5, %c0_6] : memref<1x32xf32, #tpu.memory_space<vmem>>, vector<1x32xf32>
    %c0_7 = arith.constant 0 : index
    %c0_8 = arith.constant 0 : index
    %4 = vector.load %arg1[%c0_7, %c0_8] : memref<2x1024xf32, #tpu.memory_space<vmem>>, vector<2x1024xf32>
    %cst = arith.constant dense<0.000000e+00> : vector<2x128xf32>
    %5 = tpu.matmul %4, %0, %cst {dimension_numbers = #tpu.dot_dimension_numbers<[1], [0], [0], [1], [0, 0, 1, 1], [], []>} : vector<2x1024xf32>, vector<1024x128xf32>, vector<2x128xf32> -> vector<2x128xf32>
    %6 = vector.broadcast %1 : vector<1x128xf32> to vector<2x128xf32>
    %7 = arith.addf %5, %6 : vector<2x128xf32>
    %cst_9 = arith.constant 0.000000e+00 : f32
    %8 = vector.broadcast %cst_9 : f32 to vector<2x128xf32>
    %9 = arith.maximumf %7, %8 : vector<2x128xf32>
    %cst_10 = arith.constant dense<0.000000e+00> : vector<2x32xf32>
    %10 = tpu.matmul %9, %2, %cst_10 {dimension_numbers = #tpu.dot_dimension_numbers<[1], [0], [0], [1], [0, 0, 1, 1], [], []>} : vector<2x128xf32>, vector<128x32xf32>, vector<2x32xf32> -> vector<2x32xf32>
    %11 = vector.broadcast %3 : vector<1x32xf32> to vector<2x32xf32>
    %12 = arith.addf %10, %11 : vector<2x32xf32>
    %c0_11 = arith.constant 0 : index
    %c0_12 = arith.constant 0 : index
    %13 = vector.load %arg8[%c0_11, %c0_12] : memref<2x32xf32, #tpu.memory_space<vmem>>, vector<2x32xf32>
    tpu.vector_store %arg8[%c0_11, %c0_12], %12 {strides = array<i32>} : memref<2x32xf32, #tpu.memory_space<vmem>>, vector<2x32xf32>,
    %c0_13 = arith.constant 0 : index
    %c0_14 = arith.constant 0 : index
    %14 = vector.load %arg2[%c0_13, %c0_14] : memref<2x1024xf32, #tpu.memory_space<vmem>>, vector<2x1024xf32>
    %cst_15 = arith.constant dense<0.000000e+00> : vector<2x128xf32>
    %15 = tpu.matmul %14, %0, %cst_15 {dimension_numbers = #tpu.dot_dimension_numbers<[1], [0], [0], [1], [0, 0, 1, 1], [], []>} : vector<2x1024xf32>, vector<1024x128xf32>, vector<2x128xf32> -> vector<2x128xf32>
    %16 = vector.broadcast %1 : vector<1x128xf32> to vector<2x128xf32>
    %17 = arith.addf %15, %16 : vector<2x128xf32>
    %cst_16 = arith.constant 0.000000e+00 : f32
    %18 = vector.broadcast %cst_16 : f32 to vector<2x128xf32>
    %19 = arith.maximumf %17, %18 : vector<2x128xf32>
    %cst_17 = arith.constant dense<0.000000e+00> : vector<2x32xf32>
    %20 = tpu.matmul %19, %2, %cst_17 {dimension_numbers = #tpu.dot_dimension_numbers<[1], [0], [0], [1], [0, 0, 1, 1], [], []>} : vector<2x128xf32>, vector<128x32xf32>, vector<2x32xf32> -> vector<2x32xf32>
    %21 = vector.broadcast %3 : vector<1x32xf32> to vector<2x32xf32>
    %22 = arith.addf %20, %21 : vector<2x32xf32>
    %c0_18 = arith.constant 0 : index
    %c0_19 = arith.constant 0 : index
    %23 = vector.load %arg9[%c0_18, %c0_19] : memref<2x32xf32, #tpu.memory_space<vmem>>, vector<2x32xf32>
    tpu.vector_store %arg9[%c0_18, %c0_19], %22 {strides = array<i32>} : memref<2x32xf32, #tpu.memory_space<vmem>>, vector<2x32xf32>,
    %c0_20 = arith.constant 0 : index
    %c0_21 = arith.constant 0 : index
    %24 = vector.load %arg3[%c0_20, %c0_21] : memref<2x1024xf32, #tpu.memory_space<vmem>>, vector<2x1024xf32>
    %cst_22 = arith.constant dense<0.000000e+00> : vector<2x128xf32>
    %25 = tpu.matmul %24, %0, %cst_22 {dimension_numbers = #tpu.dot_dimension_numbers<[1], [0], [0], [1], [0, 0, 1, 1], [], []>} : vector<2x1024xf32>, vector<1024x128xf32>, vector<2x128xf32> -> vector<2x128xf32>
    %26 = vector.broadcast %1 : vector<1x128xf32> to vector<2x128xf32>
    %27 = arith.addf %25, %26 : vector<2x128xf32>
    %cst_23 = arith.constant 0.000000e+00 : f32
    %28 = vector.broadcast %cst_23 : f32 to vector<2x128xf32>
    %29 = arith.maximumf %27, %28 : vector<2x128xf32>
    %cst_24 = arith.constant dense<0.000000e+00> : vector<2x32xf32>
    %30 = tpu.matmul %29, %2, %cst_24 {dimension_numbers = #tpu.dot_dimension_numbers<[1], [0], [0], [1], [0, 0, 1, 1], [], []>} : vector<2x128xf32>, vector<128x32xf32>, vector<2x32xf32> -> vector<2x32xf32>
    %31 = vector.broadcast %3 : vector<1x32xf32> to vector<2x32xf32>
    %32 = arith.addf %30, %31 : vector<2x32xf32>
    %c0_25 = arith.constant 0 : index
    %c0_26 = arith.constant 0 : index
    %33 = vector.load %arg10[%c0_25, %c0_26] : memref<2x32xf32, #tpu.memory_space<vmem>>, vector<2x32xf32>
    tpu.vector_store %arg10[%c0_25, %c0_26], %32 {strides = array<i32>} : memref<2x32xf32, #tpu.memory_space<vmem>>, vector<2x32xf32>,
    return
  }
  func.func @transform_0(%arg0: i32) -> (i32, i32) {
    %c0_i32 = arith.constant 0 : i32
    %c0_i32_0 = arith.constant 0 : i32
    %c0_i32_1 = arith.constant 0 : i32
    return %c0_i32, %c0_i32_0 : i32, i32
  }
  func.func @transform_1(%arg0: i32) -> (i32, i32) {
    %c0_i32 = arith.constant 0 : i32
    %c0_i32_0 = arith.constant 0 : i32
    %c0_i32_1 = arith.constant 0 : i32
    return %c0_i32, %c0_i32_0 : i32, i32
  }
  func.func @transform_2(%arg0: i32) -> (i32, i32) {
    %c0_i32 = arith.constant 0 : i32
    %c0_i32_0 = arith.constant 0 : i32
    %c0_i32_1 = arith.constant 0 : i32
    return %c0_i32, %c0_i32_0 : i32, i32
  }
  func.func @transform_3(%arg0: i32) -> (i32, i32) {
    %c0_i32 = arith.constant 0 : i32
    %c0_i32_0 = arith.constant 0 : i32
    %c0_i32_1 = arith.constant 0 : i32
    return %c0_i32, %c0_i32_0 : i32, i32
  }
  func.func @transform_4(%arg0: i32) -> (i32, i32) {
    %c0_i32 = arith.constant 0 : i32
    %c0_i32_0 = arith.constant 0 : i32
    %c0_i32_1 = arith.constant 0 : i32
    return %c0_i32, %c0_i32_0 : i32, i32
  }
  func.func @transform_5(%arg0: i32) -> (i32, i32) {
    %c0_i32 = arith.constant 0 : i32
    %c0_i32_0 = arith.constant 0 : i32
    %c0_i32_1 = arith.constant 0 : i32
    return %c0_i32, %c0_i32_0 : i32, i32
  }
  func.func @transform_6(%arg0: i32) -> (i32, i32) {
    %c0_i32 = arith.constant 0 : i32
    %c0_i32_0 = arith.constant 0 : i32
    %c0_i32_1 = arith.constant 0 : i32
    return %c0_i32, %c0_i32_0 : i32, i32
  }
  func.func @transform_7(%arg0: i32) -> (i32, i32) {
    %c0_i32 = arith.constant 0 : i32
    %c0_i32_0 = arith.constant 0 : i32
    %c0_i32_1 = arith.constant 0 : i32
    return %c0_i32, %c0_i32_0 : i32, i32
  }
  func.func @transform_8(%arg0: i32) -> (i32, i32) {
    %c0_i32 = arith.constant 0 : i32
    %c0_i32_0 = arith.constant 0 : i32
    %c0_i32_1 = arith.constant 0 : i32
    return %c0_i32, %c0_i32_0 : i32, i32
  }
  func.func @transform_9(%arg0: i32) -> (i32, i32) {
    %c0_i32 = arith.constant 0 : i32
    %c0_i32_0 = arith.constant 0 : i32
    %c0_i32_1 = arith.constant 0 : i32
    return %c0_i32, %c0_i32_0 : i32, i32
  }
}

</mosaic_0001>

<bundles_post_ra>
// kernel: _triplet_net_forward.1
= control target key start
LH: loop header
LB: loop body
LE: loop exit
PB: predicated region body
PF: predicated region fallthrough
CT: control target
= control target key end

     0   :  { %15 = vsyncpa [#allocation3], 0  ;;  %s3196_s0 = inlined_call_operand.vmem [shape: f32[2,1024], index: 0, kind: input, shape index: {}]   ;;  %s3197_s1 = inlined_call_operand.vmem [shape: f32[2,1024], index: 1, kind: input, shape index: {}]   ;;  %s3198_s2 = inlined_call_operand.vmem [shape: f32[2,1024], index: 2, kind: input, shape index: {}]   ;;  %s3199_s3 = inlined_call_operand.hbm [shape: f32[1024,128], index: 3, kind: input, shape index: {}]   ;;  %s3200_s4 = inlined_call_operand.vmem [shape: f32[1,128], index: 4, kind: input, shape index: {}]   ;;  %s3201_s5 = inlined_call_operand.vmem [shape: f32[128,32], index: 5, kind: input, shape index: {}]   ;;  %s3202_s6 = inlined_call_operand.vmem [shape: f32[1,32], index: 6, kind: input, shape index: {}]   ;;  %s3203_s7 = inlined_call_operand.hbm [shape: f32[2,32], index: 7, kind: output, shape index: {0}]   ;;  %s3204_s8 = inlined_call_operand.hbm [shape: f32[2,32], index: 8, kind: output, shape index: {1}]   ;;  %s3205_s9 = inlined_call_operand.hbm [shape: f32[2,32], index: 9, kind: output, shape index: {2}]  }
   0x1   :  { %16 = vsyncpa [#allocation4], 0 }
   0x2   :  { %17 = vsyncpa [#allocation7], 0  ;;  %s2584_s30 = smov [#allocation2]   ;;  %s2490_s13 = scalar_lea.hbm %s3199_s3, 16384 }
   0x3   :  { %s29_s10 = sshll.u32 %s2584_s30, 4  ;;  %p2491_p0 = scmp.ne.s32.totalorder %s3199_s3, %s2490_s13  ;;  %s30_s10 = int_to_ptr.vmem [resolvable:$true] %s29_s10 }
   0x4   :  { %p2494_p1 = scmp.lt.u32.totalorder %s2490_s13, %s3199_s3 }
   0x6   :  { %p2496_p2 = pnand %p2494_p1, %p2491_p0 }
   0x8   :  { %2499 = shalt.err (!%p2496_p2)
}
   0x9   :  { %s2500_s18 = scalar_lea.vmem %s30_s10, 16384  ;;  %p2505_p4 = scmp.lt.s32.totalorder %s30_s10, %s30_s10 }
   0xa   :  { %p2501_p3 = scmp.ne.s32.totalorder %s30_s10, %s2500_s18  ;;  %p2506_p5 = scmp.lt.s32.totalorder %s2500_s18, %s2500_s18 }
   0xc   :  { %p2507_p6 = por %p2506_p5, %p2505_p4 }
   0xe   :  { %p2508_p7 = pnand %p2507_p6, %p2501_p3 }
  0x10   :  { %2511 = shalt.err (!%p2508_p7)
}
  0x11   :  { %s2585_s19 = smov 128   ;;  %s2586_s20 = smov 8  }
  0x12   :  { %35 = dma.hbm_to_vmem [thread:$0]  %s3199_s3, 16384, %s30_s10, [#allocation3], %s2585_s19, %s2585_s19, %s2586_s20  }
  0x13   :  { %2578 = dma.done.wait [#allocation3], 16384  }
  0x14   :  { %2579 = vsyncadd [#allocation3], 4294950912  ;;  %v61_v0 = vld [vmem:[#allocation2 + $0x80] sm:$0xff]  ;;  %v62_v1 = vld [vmem:[#allocation2 + $0x88] sm:$0xff]  ;;  %v2587_v47 = vmov 1983009808   ;;  %v205_v49 = vlaneseq }
  0x15   :  { %v45_v2 = vld [vmem:[#allocation2] sm:$0xff]  ;;  %v2656_v3 = vpack.c.bf16 %v62_v1, %v61_v0  ;;  %v46_v4 = vld [vmem:[#allocation2 + $0x8] sm:$0xff]  ;;  %v63_v11 = vld [vmem:[#allocation2 + $0x90] sm:$0xff]  ;;  %v203_v48 = vunpack.c.l.s4 %v2587_v47  ;;  %vm2589_vm0 = vmmov 0   ;;  %vm600_vm1 = vcmask 254976   ;;  %s2592_s22 = smov [#allocation5]  }
  0x16   :  { %v93_v5 = vld [vmem:[#allocation2 + $0x180] sm:$0xff]  ;;  %v94_v6 = vld [vmem:[#allocation2 + $0x188] sm:$0xff]  ;;  %v2658_v7 = vpack.c.bf16 %v46_v4, %v45_v2  ;;  %v64_v13 = vld [vmem:[#allocation2 + $0x98] sm:$0xff]  ;;  %v206_v0 = vshrl.u32 %v205_v49, 7  ;;  %s1404_s3 = sshll.u32 %s2592_s22, 4  ;;  %s1405_s3 = int_to_ptr.vmem [resolvable:$true] %s1404_s3 }
  0x17   :  { %v2660_v8 = vpack.c.bf16 %v94_v6, %v93_v5  ;;  %v77_v9 = vld [vmem:[#allocation2 + $0x100] sm:$0xff]  ;;  %v78_v10 = vld [vmem:[#allocation2 + $0x108] sm:$0xff]  ;;  %2019 = vmatprep.subr.bf16.mxu0 %v2656_v3  ;;  %v47_v14 = vld [vmem:[#allocation2 + $0x10] sm:$0xff]  ;;  %v2667_v16 = vpack.c.bf16 %v64_v13, %v63_v11  ;;  %v204_v63 = vunpack.c.0.s8 %v203_v48 }
  0x18   :  { %v2663_v12 = vpack.c.bf16 %v78_v10, %v77_v9  ;;  %v48_v15 = vld [vmem:[#allocation2 + $0x18] sm:$0xff]  ;;  %2021 = vmatpush3.bf16.msra.mxu0 %v2658_v7  ;;  %v95_v18 = vld [vmem:[#allocation2 + $0x190] sm:$0xff]  ;;  %v65_v23 = vld [vmem:[#allocation2 + $0xa0] sm:$0xff] }
  0x19   :  { %2051 = vmatprep.subr.bf16.mxu1 %v2660_v8  ;;  %v2669_v17 = vpack.c.bf16 %v48_v15, %v47_v14  ;;  %v96_v19 = vld [vmem:[#allocation2 + $0x198] sm:$0xff]  ;;  %v79_v20 = vld [vmem:[#allocation2 + $0x110] sm:$0xff]  ;;  %v66_v24 = vld [vmem:[#allocation2 + $0xa8] sm:$0xff]  ;;  %2023 = vmatprep.subr.bf16.mxu0 %v2667_v16 }
  0x1a   :  { %2053 = vmatpush3.bf16.msra.mxu1 %v2663_v12  ;;  %v2672_v21 = vpack.c.bf16 %v96_v19, %v95_v18  ;;  %v80_v22 = vld [vmem:[#allocation2 + $0x118] sm:$0xff]  ;;  %v2677_v26 = vpack.c.bf16 %v66_v24, %v65_v23  ;;  %v49_v27 = vld [vmem:[#allocation2 + $0x20] sm:$0xff]  ;;  %v50_v28 = vld [vmem:[#allocation2 + $0x28] sm:$0xff]  ;;  %v2718_v19 = vsub.s32 %v204_v63, %v206_v0 }
  0x1b   :  { %v2675_v25 = vpack.c.bf16 %v80_v22, %v79_v20  ;;  %v97_v29 = vld [vmem:[#allocation2 + $0x1a0] sm:$0xff]  ;;  %v98_v30 = vld [vmem:[#allocation2 + $0x1a8] sm:$0xff]  ;;  %v2681_v33 = vpack.c.bf16 %v50_v28, %v49_v27  ;;  %v67_v35 = vld [vmem:[#allocation2 + $0xb0] sm:$0xff] }
  0x1c   :  { %2055 = vmatprep.subr.bf16.mxu1 %v2672_v21  ;;  %v81_v31 = vld [vmem:[#allocation2 + $0x120] sm:$0xff]  ;;  %v82_v32 = vld [vmem:[#allocation2 + $0x128] sm:$0xff]  ;;  %2025 = vmatpush3.bf16.msra.mxu0 %v2669_v17  ;;  %v2683_v34 = vpack.c.bf16 %v98_v30, %v97_v29  ;;  %v68_v36 = vld [vmem:[#allocation2 + $0xb8] sm:$0xff] }
  0x1d   :  { %v51_v37 = vld [vmem:[#allocation2 + $0x30] sm:$0xff]  ;;  %2027 = vmatprep.subr.bf16.mxu0 %v2677_v26  ;;  %v2687_v38 = vpack.c.bf16 %v82_v32, %v81_v31  ;;  %v2689_v39 = vpack.c.bf16 %v68_v36, %v67_v35  ;;  %v52_v40 = vld [vmem:[#allocation2 + $0x38] sm:$0xff]  ;;  %v69_v46 = vld [vmem:[#allocation2 + $0xc0] sm:$0xff] }
  0x1e   :  { %2057 = vmatpush3.bf16.msra.mxu1 %v2675_v25  ;;  %v99_v41 = vld [vmem:[#allocation2 + $0x1b0] sm:$0xff]  ;;  %v100_v42 = vld [vmem:[#allocation2 + $0x1b8] sm:$0xff]  ;;  %v70_v50 = vld [vmem:[#allocation2 + $0xc8] sm:$0xff]  ;;  %v2695_v51 = vpack.c.bf16 %v52_v40, %v51_v37 }
  0x1f   :  { %2059 = vmatprep.subr.bf16.mxu1 %v2683_v34  ;;  %v2692_v43 = vpack.c.bf16 %v100_v42, %v99_v41  ;;  %v83_v44 = vld [vmem:[#allocation2 + $0x130] sm:$0xff]  ;;  %v84_v45 = vld [vmem:[#allocation2 + $0x138] sm:$0xff]  ;;  %v101_v52 = vld [vmem:[#allocation2 + $0x1c0] sm:$0xff]  ;;  %v2701_v55 = vpack.c.bf16 %v70_v50, %v69_v46 }
  0x20   :  { %2029 = vmatpush3.bf16.msra.mxu0 %v2681_v33  ;;  %v102_v53 = vld [vmem:[#allocation2 + $0x1c8] sm:$0xff]  ;;  %v2699_v54 = vpack.c.bf16 %v84_v45, %v83_v44  ;;  %v53_v56 = vld [vmem:[#allocation2 + $0x40] sm:$0xff]  ;;  %v71_v61 = vld [vmem:[#allocation2 + $0xd0] sm:$0xff] }
  0x21   :  { %2031 = vmatprep.subr.bf16.mxu0 %v2689_v39  ;;  %v54_v57 = vld [vmem:[#allocation2 + $0x48] sm:$0xff]  ;;  %v85_v58 = vld [vmem:[#allocation2 + $0x140] sm:$0xff]  ;;  %v2704_v59 = vpack.c.bf16 %v102_v53, %v101_v52  ;;  %v72_v62 = vld [vmem:[#allocation2 + $0xd8] sm:$0xff] }
  0x22   :  { %2061 = vmatpush3.bf16.msra.mxu1 %v2687_v38  ;;  %v86_v60 = vld [vmem:[#allocation2 + $0x148] sm:$0xff]  ;;  %v103_v1 = vld [vmem:[#allocation2 + $0x1d0] sm:$0xff]  ;;  %v104_v2 = vld [vmem:[#allocation2 + $0x1d8] sm:$0xff]  ;;  %v2707_v4 = vpack.c.bf16 %v54_v57, %v53_v56  ;;  %v2713_v6 = vpack.c.bf16 %v72_v62, %v71_v61 }
  0x23   :  { %2063 = vmatprep.subr.bf16.mxu1 %v2692_v43  ;;  %v2711_v5 = vpack.c.bf16 %v86_v60, %v85_v58  ;;  %v55_v9 = vld [vmem:[#allocation2 + $0x50] sm:$0xff]  ;;  %v56_v10 = vld [vmem:[#allocation2 + $0x58] sm:$0xff]  ;;  %v2716_v13 = vpack.c.bf16 %v104_v2, %v103_v1  ;;  %v73_v15 = vld [vmem:[#allocation2 + $0xe0] sm:$0xff] }
  0x24   :  { %2033 = vmatpush3.bf16.msra.mxu0 %v2695_v51  ;;  %v87_v11 = vld [vmem:[#allocation2 + $0x150] sm:$0xff]  ;;  %v88_v14 = vld [vmem:[#allocation2 + $0x158] sm:$0xff]  ;;  %v74_v18 = vld [vmem:[#allocation2 + $0xe8] sm:$0xff]  ;;  %v2721_v23 = vpack.c.bf16 %v56_v10, %v55_v9 }
  0x25   :  { %2035 = vmatprep.subr.bf16.mxu0 %v2701_v55  ;;  %v105_v20 = vld [vmem:[#allocation2 + $0x1e0] sm:$0xff]  ;;  %v106_v22 = vld [vmem:[#allocation2 + $0x1e8] sm:$0xff]  ;;  %v2725_v27 = vpack.c.bf16 %v88_v14, %v87_v11  ;;  %v2727_v28 = vpack.c.bf16 %v74_v18, %v73_v15  ;;  %v75_v36 = vld [vmem:[#allocation2 + $0xf0] sm:$0xff] }
  0x26   :  { %2065 = vmatpush3.bf16.msra.mxu1 %v2699_v54  ;;  %v57_v24 = vld [vmem:[#allocation2 + $0x60] sm:$0xff]  ;;  %v58_v29 = vld [vmem:[#allocation2 + $0x68] sm:$0xff]  ;;  %v2733_v32 = vpack.c.bf16 %v106_v22, %v105_v20  ;;  %v76_v37 = vld [vmem:[#allocation2 + $0xf8] sm:$0xff] }
  0x27   :  { %2067 = vmatprep.subr.bf16.mxu1 %v2704_v59  ;;  %v89_v30 = vld [vmem:[#allocation2 + $0x160] sm:$0xff]  ;;  %v90_v35 = vld [vmem:[#allocation2 + $0x168] sm:$0xff]  ;;  %v107_v42 = vld [vmem:[#allocation2 + $0x1f0] sm:$0xff]  ;;  %v2737_v45 = vpack.c.bf16 %v58_v29, %v57_v24  ;;  %v2744_v49 = vpack.c.bf16 %v76_v37, %v75_v36 }
  0x28   :  { %2037 = vmatpush3.bf16.msra.mxu0 %v2707_v4  ;;  %v191_v31 = vld [vmem:[%s3196_s0] sm:$0xff]  ;;  %v108_v44 = vld [vmem:[#allocation2 + $0x1f8] sm:$0xff]  ;;  %v2742_v48 = vpack.c.bf16 %v90_v35, %v89_v30  ;;  %v59_v50 = vld [vmem:[#allocation2 + $0x70] sm:$0xff] }
  0x29   :  { %2039 = vmatprep.subr.bf16.mxu0 %v2713_v6  ;;  %v208_v40 = vrot.slane %v191_v31, %v2718_v19  ;;  %v201_v41 = vcombine.high %v191_v31, %v191_v31  ;;  %v60_v52 = vld [vmem:[#allocation2 + $0x78] sm:$0xff]  ;;  %v91_v53 = vld [vmem:[#allocation2 + $0x170] sm:$0xff]  ;;  %v2747_v56 = vpack.c.bf16 %v108_v44, %v107_v42  ;;  %v125_v58 = vld [vmem:[#allocation2 + $0x280] sm:$0xff] }
  0x2a   :  { %2069 = vmatpush3.bf16.msra.mxu1 %v2711_v5  ;;  %v92_v57 = vld [vmem:[#allocation2 + $0x178] sm:$0xff]  ;;  %v126_v60 = vld [vmem:[#allocation2 + $0x288] sm:$0xff]  ;;  %v157_v62 = vld [vmem:[#allocation2 + $0x380] sm:$0xff]  ;;  %v2750_v0 = vpack.c.bf16 %v60_v52, %v59_v50 }
  0x2b   :  { %2071 = vmatprep.subr.bf16.mxu1 %v2716_v13  ;;  %v216_v46 = vcombine.high %v208_v40, %v208_v40  ;;  %v215_v47 = vrot.slane %v201_v41, %v2718_v19  ;;  %3253 = vst [vmem:[#allocation12_spill] sm:$0xff] %v2747_v56  ;;  %v158_v63 = vld [vmem:[#allocation2 + $0x388] sm:$0xff]  ;;  %v2754_v1 = vpack.c.bf16 %v92_v57, %v91_v53  ;;  %v109_v9 = vld [vmem:[#allocation2 + $0x200] sm:$0xff]  ;;  %v127_v18 = vld [vmem:[#allocation2 + $0x290] sm:$0xff] }
  0x2c   :  { %2041 = vmatpush3.bf16.msra.mxu0 %v2721_v23  ;;  %3254 = vst [vmem:[#allocation13_spill] sm:$0xff] %v2750_v0  ;;  %v2756_v2 = vpack.c.bf16 %v126_v60, %v125_v58  ;;  %v110_v10 = vld [vmem:[#allocation2 + $0x208] sm:$0xff]  ;;  %v141_v11 = vld [vmem:[#allocation2 + $0x300] sm:$0xff]  ;;  %v2759_v14 = vpack.c.bf16 %v158_v63, %v157_v62  ;;  %v128_v20 = vld [vmem:[#allocation2 + $0x298] sm:$0xff] }
  0x2d   :  { %2043 = vmatprep.subr.bf16.mxu0 %v2727_v28  ;;  %307 = vmatprep.mubr.f32.mxu0 %v216_v46  ;;  %v217_v61 = vcombine.high %v215_v47, %v215_v47  ;;  %3255 = vst [vmem:[#allocation14_spill] sm:$0xff] %v2754_v1  ;;  %v142_v15 = vld [vmem:[#allocation2 + $0x308] sm:$0xff]  ;;  %v159_v22 = vld [vmem:[#allocation2 + $0x390] sm:$0xff]  ;;  %v160_v24 = vld [vmem:[#allocation2 + $0x398] sm:$0xff]  ;;  %v2762_v29 = vpack.c.bf16 %v110_v10, %v109_v9 }
  0x2e   :  { %2073 = vmatpush3.bf16.msra.mxu1 %v2725_v27  ;;  %3256 = vst [vmem:[#allocation15_spill] sm:$0xff] %v2756_v2  ;;  %3257 = vst [vmem:[#allocation16_spill] sm:$0xff] %v2759_v14  ;;  %v2766_v30 = vpack.c.bf16 %v142_v15, %v141_v11  ;;  %v2768_v31 = vpack.c.bf16 %v128_v20, %v127_v18  ;;  %v111_v35 = vld [vmem:[#allocation2 + $0x210] sm:$0xff]  ;;  %v112_v36 = vld [vmem:[#allocation2 + $0x218] sm:$0xff]  ;;  %v2771_v41 = vpack.c.bf16 %v160_v24, %v159_v22 }
  0x2f   :  { %2075 = vmatprep.subr.bf16.mxu1 %v2733_v32  ;;  %377 = vmatprep.mubr.f32.mxu1 %v217_v61  ;;  %v143_v37 = vld [vmem:[#allocation2 + $0x310] sm:$0xff]  ;;  %v144_v42 = vld [vmem:[#allocation2 + $0x318] sm:$0xff]  ;;  %v129_v44 = vld [vmem:[#allocation2 + $0x2a0] sm:$0xff]  ;;  %v2774_v53 = vpack.c.bf16 %v112_v36, %v111_v35 }
  0x30   :  { %2045 = vmatpush3.bf16.msra.mxu0 %v2737_v45  ;;  %3258 = vst [vmem:[#allocation17_spill] sm:$0xff] %v2766_v30  ;;  %3259 = vst [vmem:[#allocation18_spill] sm:$0xff] %v2771_v41  ;;  %v130_v46 = vld [vmem:[#allocation2 + $0x2a8] sm:$0xff]  ;;  %v161_v50 = vld [vmem:[#allocation2 + $0x3a0] sm:$0xff]  ;;  %v2778_v57 = vpack.c.bf16 %v144_v42, %v143_v37 }
  0x31   :  { %2047 = vmatprep.subr.bf16.mxu0 %v2744_v49  ;;  %v162_v52 = vld [vmem:[#allocation2 + $0x3a8] sm:$0xff]  ;;  %v2780_v58 = vpack.c.bf16 %v130_v46, %v129_v44  ;;  %v113_v60 = vld [vmem:[#allocation2 + $0x220] sm:$0xff]  ;;  %v131_v9 = vld [vmem:[#allocation2 + $0x2b0] sm:$0xff] }
  0x32   :  { %2077 = vmatpush3.bf16.msra.mxu1 %v2742_v48  ;;  %3260 = vst [vmem:[#allocation19_spill] sm:$0xff] %v2778_v57  ;;  %v114_v61 = vld [vmem:[#allocation2 + $0x228] sm:$0xff]  ;;  %v145_v62 = vld [vmem:[#allocation2 + $0x320] sm:$0xff]  ;;  %v163_v10 = vld [vmem:[#allocation2 + $0x3b0] sm:$0xff] }
  0x33   :  { %2079 = vmatprep.subr.bf16.mxu1 %v2747_v56  ;;  %v146_v63 = vld [vmem:[#allocation2 + $0x328] sm:$0xff]  ;;  %v164_v11 = vld [vmem:[#allocation2 + $0x3b8] sm:$0xff]  ;;  %v2786_v15 = vpack.c.bf16 %v114_v61, %v113_v60  ;;  %v115_v22 = vld [vmem:[#allocation2 + $0x230] sm:$0xff] }
  0x34   :  { %2049 = vmatpush3.bf16.msra.mxu0 %v2750_v0  ;;  %v2790_v18 = vpack.c.bf16 %v146_v63, %v145_v62  ;;  %v116_v24 = vld [vmem:[#allocation2 + $0x238] sm:$0xff]  ;;  %v147_v35 = vld [vmem:[#allocation2 + $0x330] sm:$0xff]  ;;  %v2795_v36 = vpack.c.bf16 %v164_v11, %v163_v10  ;;  %v133_v42 = vld [vmem:[#allocation2 + $0x2c0] sm:$0xff] }
  0x35   :  { %2083 = vmatprep.subr.bf16.mxu0 %v2756_v2  ;;  %v148_v37 = vld [vmem:[#allocation2 + $0x338] sm:$0xff]  ;;  %v134_v44 = vld [vmem:[#allocation2 + $0x2c8] sm:$0xff]  ;;  %v165_v46 = vld [vmem:[#allocation2 + $0x3c0] sm:$0xff]  ;;  %v2801_v60 = vpack.c.bf16 %v116_v24, %v115_v22 }
  0x36   :  { %2081 = vmatpush3.bf16.msra.mxu1 %v2754_v1  ;;  %3262 = vst [vmem:[#allocation21_spill] sm:$0xff] %v2790_v18  ;;  %3263 = vst [vmem:[#allocation22_spill] sm:$0xff] %v2795_v36  ;;  %v2808_v63 = vpack.c.bf16 %v148_v37, %v147_v35  ;;  %v118_v10 = vld [vmem:[#allocation2 + $0x248] sm:$0xff]  ;;  %v149_v11 = vld [vmem:[#allocation2 + $0x340] sm:$0xff] }
  0x37   :  { %2115 = vmatprep.subr.bf16.mxu1 %v2759_v14  ;;  %308 = vmatmul.mubr.f32.vlgmr.msra.gmra.mrb[0].mxu0 %v208_v40  ;;  %v2783_v40 = vpack.c.bf16 %v162_v52, %v161_v50  ;;  %v166_v50 = vld [vmem:[#allocation2 + $0x3c8] sm:$0xff]  ;;  %v135_v24 = vld [vmem:[#allocation2 + $0x2d0] sm:$0xff]  ;;  %v168_v35 = vld [vmem:[#allocation2 + $0x3d8] sm:$0xff] }
  0x38   :  { %2085 = vmatpush3.bf16.msra.mxu0 %v2762_v29  ;;  %v192_v52 = vld [vmem:[%s3196_s0 + $0x8] sm:$0xff]  ;;  %3264 = vst [vmem:[#allocation23_spill] sm:$0xff] %v2808_v63  ;;  %v152_v14 = vld [vmem:[#allocation2 + $0x358] sm:$0xff] }
  0x39   :  { %378 = vmatmul.mubr.f32.vlgmr.msra.gmra.mrb[0].mxu1 %v215_v47  ;;  %2087 = vmatprep.subr.bf16.mxu0 %v2768_v31  ;;  %3261 = vst [vmem:[#allocation20_spill] sm:$0xff] %v2783_v40  ;;  %v132_v47 = vld [vmem:[#allocation2 + $0x2b8] sm:$0xff]  ;;  %v2804_v61 = vrot.slane %v192_v52, %v2718_v19  ;;  %v218_v62 = vcombine.high %v192_v52, %v192_v52  ;;  %v150_v22 = vld [vmem:[#allocation2 + $0x348] sm:$0xff] }
  0x3a   :  { %2117 = vmatpush3.bf16.msra.mxu1 %v2766_v30  ;;  %v2792_v20 = vpack.c.bf16 %v132_v47, %v131_v9  ;;  %v2810_v9 = vpack.c.bf16 %v134_v44, %v133_v42  ;;  %v117_v47 = vld [vmem:[#allocation2 + $0x240] sm:$0xff]  ;;  %v2823_v44 = vpack.c.bf16 %v150_v22, %v149_v11  ;;  %v151_v30 = vld [vmem:[#allocation2 + $0x350] sm:$0xff]  ;;  %v170_v1 = vld [vmem:[#allocation2 + $0x3e8] sm:$0xff] }
  0x3b   :  { %2119 = vmatprep.subr.bf16.mxu1 %v2771_v41  ;;  %v233_v52 = vcombine.high %v2804_v61, %v2804_v61  ;;  %v167_v41 = vld [vmem:[#allocation2 + $0x3d0] sm:$0xff]  ;;  %v2819_v37 = vpack.c.bf16 %v118_v10, %v117_v47  ;;  %v137_v47 = vld [vmem:[#allocation2 + $0x2e0] sm:$0xff]  ;;  %v138_v10 = vld [vmem:[#allocation2 + $0x2e8] sm:$0xff] }
  0x3c   :  { %2089 = vmatpush3.bf16.msra.mxu0 %v2774_v53  ;;  %3267 = vst [vmem:[#allocation26_spill] sm:$0xff] %v2823_v44  ;;  %v2837_v11 = vpack.c.bf16 %v138_v10, %v137_v47  ;;  %v122_v22 = vld [vmem:[#allocation2 + $0x268] sm:$0xff]  ;;  %v140_v56 = vld [vmem:[#allocation2 + $0x2f8] sm:$0xff]  ;;  %v123_v47 = vld [vmem:[#allocation2 + $0x270] sm:$0xff] }
  0x3d   :  { %2091 = vmatprep.subr.bf16.mxu0 %v2780_v58  ;;  %3266 = vst [vmem:[#allocation25_spill] sm:$0xff] %v2819_v37  ;;  %447 = vmatprep.mubr.f32.mxu0 %v233_v52  ;;  %v169_v52 = vld [vmem:[#allocation2 + $0x3e0] sm:$0xff] }
  0x3e   :  { %2121 = vmatpush3.bf16.msra.mxu1 %v2778_v57  ;;  %v136_v57 = vld [vmem:[#allocation2 + $0x2d8] sm:$0xff]  ;;  %3271 = vst [vmem:[#allocation30_spill] sm:$0xff] %v2837_v11 }
  0x3f   :  { %2123 = vmatprep.subr.bf16.mxu1 %v2783_v40  ;;  %v2813_v40 = vpack.c.bf16 %v166_v50, %v165_v46  ;;  %v2825_v46 = vpack.c.bf16 %v136_v57, %v135_v24  ;;  %v119_v50 = vld [vmem:[#allocation2 + $0x250] sm:$0xff]  ;;  %v2835_v57 = vpack.c.bf16 %v152_v14, %v151_v30  ;;  %v153_v24 = vld [vmem:[#allocation2 + $0x360] sm:$0xff] }
  0x40   :  { %2093 = vmatpush3.bf16.msra.mxu0 %v2786_v15 }
  0x41   :  { %2095 = vmatprep.subr.bf16.mxu0 %v2792_v20  ;;  %3265 = vst [vmem:[#allocation24_spill] sm:$0xff] %v2813_v40  ;;  %3268 = vst [vmem:[#allocation27_spill] sm:$0xff] %v2825_v46 }
  0x42   :  { %2125 = vmatpush3.bf16.msra.mxu1 %v2790_v18  ;;  %v232_v18 = vrot.slane %v218_v62, %v2718_v19  ;;  %v2828_v62 = vpack.c.bf16 %v168_v35, %v167_v41  ;;  %v121_v41 = vld [vmem:[#allocation2 + $0x260] sm:$0xff]  ;;  %v2840_v35 = vpack.c.bf16 %v170_v1, %v169_v52  ;;  %v124_v1 = vld [vmem:[#allocation2 + $0x278] sm:$0xff]  ;;  %v155_v52 = vld [vmem:[#allocation2 + $0x370] sm:$0xff] }
  0x43   :  { %2127 = vmatprep.subr.bf16.mxu1 %v2795_v36  ;;  %v120_v36 = vld [vmem:[#allocation2 + $0x258] sm:$0xff] }
  0x44   :  { %2097 = vmatpush3.bf16.msra.mxu0 %v2801_v60  ;;  %v234_v42 = vcombine.high %v232_v18, %v232_v18  ;;  %3269 = vst [vmem:[#allocation28_spill] sm:$0xff] %v2828_v62 }
  0x45   :  { %2099 = vmatprep.subr.bf16.mxu0 %v2810_v9 }
  0x46   :  { %2129 = vmatpush3.bf16.msra.mxu1 %v2808_v63  ;;  %517 = vmatprep.mubr.f32.mxu1 %v234_v42  ;;  %v2831_v63 = vpack.c.bf16 %v120_v36, %v119_v50  ;;  %v154_v42 = vld [vmem:[#allocation2 + $0x368] sm:$0xff]  ;;  %v171_v36 = vld [vmem:[#allocation2 + $0x3f0] sm:$0xff]  ;;  %v172_v50 = vld [vmem:[#allocation2 + $0x3f8] sm:$0xff] }
  0x47   :  { %2131 = vmatprep.subr.bf16.mxu1 %v2813_v40  ;;  %v139_v40 = vld [vmem:[#allocation2 + $0x2f0] sm:$0xff]  ;;  %v2847_v14 = vpack.c.bf16 %v154_v42, %v153_v24  ;;  %v2852_v10 = vpack.c.bf16 %v172_v50, %v171_v36  ;;  %v177_v24 = vld [vmem:[%s3201_s5 + $0x18] sm:$0xff]  ;;  %v178_v36 = vld [vmem:[%s3201_s5 + $0x20] sm:$0xff] }
  0x48   :  { %2101 = vmatpush3.bf16.msra.mxu0 %v2819_v37  ;;  %3270 = vst [vmem:[#allocation29_spill] sm:$0xff] %v2831_v63  ;;  %v2849_v30 = vpack.c.bf16 %v140_v56, %v139_v40  ;;  %v174_v56 = vld [vmem:[%s3201_s5] sm:$0xff]  ;;  %v175_v40 = vld [vmem:[%s3201_s5 + $0x8] sm:$0xff] }
  0x49   :  { %2103 = vmatprep.subr.bf16.mxu0 %v2825_v46  ;;  %v179_v50 = vld [vmem:[%s3201_s5 + $0x28] sm:$0xff] }
  0x4a   :  { %2133 = vmatpush3.bf16.msra.mxu1 %v2823_v44  ;;  %v2843_v44 = vpack.c.bf16 %v122_v22, %v121_v41  ;;  %3273 = vst [vmem:[#allocation32_spill] sm:$0xff] %v2849_v30  ;;  %v2855_v41 = vpack.c.bf16 %v124_v1, %v123_v47  ;;  %v2908_v47 = vpack.c.bf16 %v179_v50, %v178_v36  ;;  %v180_v1 = vld [vmem:[%s3201_s5 + $0x30] sm:$0xff]  ;;  %v185_v50 = vld [vmem:[%s3201_s5 + $0x58] sm:$0xff] }
  0x4b   :  { %2135 = vmatprep.subr.bf16.mxu1 %v2828_v62  ;;  %v156_v62 = vld [vmem:[#allocation2 + $0x378] sm:$0xff]  ;;  %v184_v36 = vld [vmem:[%s3201_s5 + $0x50] sm:$0xff] }
  0x4c   :  { %2105 = vmatpush3.bf16.msra.mxu0 %v2831_v63  ;;  %3272 = vst [vmem:[#allocation31_spill] sm:$0xff] %v2843_v44  ;;  %3274 = vst [vmem:[#allocation33_spill] sm:$0xff] %v2855_v41  ;;  %v2859_v22 = vpack.c.bf16 %v156_v62, %v155_v52  ;;  %v2892_v62 = vpack.c.bf16 %v175_v40, %v174_v56  ;;  %v181_v52 = vld [vmem:[%s3201_s5 + $0x38] sm:$0xff]  ;;  %v182_v40 = vld [vmem:[%s3201_s5 + $0x40] sm:$0xff] }
  0x4d   :  { %2107 = vmatprep.subr.bf16.mxu0 %v2837_v11  ;;  %3277 = vst [vmem:[#allocation36_spill] sm:$0xff] %v2908_v47  ;;  %v2918_v56 = vpack.c.bf16 %v181_v52, %v180_v1  ;;  %v2938_v1 = vpack.c.bf16 %v185_v50, %v184_v36  ;;  %v186_v52 = vld [vmem:[%s3201_s5 + $0x60] sm:$0xff]  ;;  %v188_v36 = vld [vmem:[%s3201_s5 + $0x70] sm:$0xff]  ;;  %v189_v50 = vld [vmem:[%s3201_s5 + $0x78] sm:$0xff] }
  0x4e   :  { %2137 = vmatpush3.bf16.msra.mxu1 %v2835_v57  ;;  %3275 = vst [vmem:[#allocation34_spill] sm:$0xff] %v2892_v62 }
  0x4f   :  { %2139 = vmatprep.subr.bf16.mxu1 %v2840_v35  ;;  %3278 = vst [vmem:[#allocation37_spill] sm:$0xff] %v2918_v56  ;;  %3280 = vst [vmem:[#allocation39_spill] sm:$0xff] %v2938_v1 }
  0x50   :  { %2109 = vmatpush3.bf16.msra.mxu0 %v2843_v44 }
  0x51   :  { %2111 = vmatprep.subr.bf16.mxu0 %v2849_v30 }
  0x52   :  { %2141 = vmatpush3.bf16.msra.mxu1 %v2847_v14 }
  0x53   :  { %2143 = vmatprep.subr.bf16.mxu1 %v2852_v10 }
  0x54   :  { %2113 = vmatpush3.bf16.msra.mxu0 %v2855_v41 }
  0x56   :  { %2145 = vmatpush3.bf16.msra.mxu1 %v2859_v22 }
  0x57   :  { %2171 = vmatprep.subr.bf16.mxu1 %v2656_v3  ;;  %448 = vmatmul.mubr.f32.vlgmr.msra.gmra.mrb[2].mxu0 %v2804_v61  ;;  %v3233_v61 = vmov 0.0|0.0  }
  0x58   :  { %2146 = vmatprep.subr.bf16.mxu0 %v3233_v61 }
  0x59   :  { %518 = vmatmul.mubr.f32.vlgmr.msra.gmra.mrb[2].mxu1 %v232_v18  ;;  %v176_v18 = vld [vmem:[%s3201_s5 + $0x10] sm:$0xff]  ;;  %2148 = vmatpush3.bf16.msra.mxu0 %v2892_v62 }
  0x5a   :  { %2173 = vmatpush3.bf16.msra.mxu1 %v2658_v7  ;;  %v2898_v42 = vpack.c.bf16 %v177_v24, %v176_v18  ;;  %2149 = vmatprep.subr.bf16.mxu0 %v3233_v61  ;;  %v183_v18 = vld [vmem:[%s3201_s5 + $0x48] sm:$0xff] }
  0x5b   :  { %2175 = vmatprep.subr.bf16.mxu1 %v2667_v16  ;;  %v2928_v24 = vpack.c.bf16 %v183_v18, %v182_v40  ;;  %v187_v40 = vld [vmem:[%s3201_s5 + $0x68] sm:$0xff] }
  0x5c   :  { %3276 = vst [vmem:[#allocation35_spill] sm:$0xff] %v2898_v42  ;;  %v2949_v18 = vpack.c.bf16 %v187_v40, %v186_v52  ;;  %v2966_v52 = vld [vmem:[%s3197_s1] sm:$0xff] }
  0x5d   :  { %2151 = vmatpush3.bf16.msra.mxu0 %v2898_v42  ;;  %3279 = vst [vmem:[#allocation38_spill] sm:$0xff] %v2928_v24  ;;  %v613_v40 = vrot.slane %v2966_v52, %v2718_v19 }
  0x5e   :  { %2177 = vmatpush3.bf16.msra.mxu1 %v2669_v17  ;;  %2152 = vmatprep.subr.bf16.mxu0 %v3233_v61  ;;  %3281 = vst [vmem:[#allocation40_spill] sm:$0xff] %v2949_v18 }
  0x5f   :  { %2179 = vmatprep.subr.bf16.mxu1 %v2677_v26 }
  0x61   :  { %2154 = vmatpush3.bf16.msra.mxu0 %v2908_v47 }
  0x62   :  { %2181 = vmatpush3.bf16.msra.mxu1 %v2681_v33  ;;  %2155 = vmatprep.subr.bf16.mxu0 %v3233_v61 }
  0x63   :  { %2183 = vmatprep.subr.bf16.mxu1 %v2689_v39 }
  0x65   :  { %2157 = vmatpush3.bf16.msra.mxu0 %v2918_v56 }
  0x66   :  { %2185 = vmatpush3.bf16.msra.mxu1 %v2695_v51  ;;  %2158 = vmatprep.subr.bf16.mxu0 %v3233_v61 }
  0x67   :  { %2187 = vmatprep.subr.bf16.mxu1 %v2701_v55 }
  0x69   :  { %2160 = vmatpush3.bf16.msra.mxu0 %v2928_v24 }
  0x6a   :  { %2189 = vmatpush3.bf16.msra.mxu1 %v2707_v4  ;;  %2161 = vmatprep.subr.bf16.mxu0 %v3233_v61 }
  0x6b   :  { %2191 = vmatprep.subr.bf16.mxu1 %v2713_v6 }
  0x6d   :  { %2163 = vmatpush3.bf16.msra.mxu0 %v2938_v1 }
  0x6e   :  { %2193 = vmatpush3.bf16.msra.mxu1 %v2721_v23  ;;  %2164 = vmatprep.subr.bf16.mxu0 %v3233_v61 }
  0x6f   :  { %2195 = vmatprep.subr.bf16.mxu1 %v2727_v28 }
  0x71   :  { %2166 = vmatpush3.bf16.msra.mxu0 %v2949_v18 }
  0x72   :  { %2197 = vmatpush3.bf16.msra.mxu1 %v2737_v45  ;;  %2167 = vmatprep.subr.bf16.mxu0 %v3233_v61  ;;  %v3236_v61 = vmov 0.0  }
  0x73   :  { %2199 = vmatprep.subr.bf16.mxu1 %v2744_v49  ;;  %1945 = vmatprep.mubr.msk.f32.mxu0 %vm2589_vm0, %v3236_v61 }
  0x76   :  { %2201 = vmatpush3.bf16.msra.mxu1 %v2750_v0  ;;  %v621_v0 = vcombine.high %v613_v40, %v613_v40 }
  0x77   :  { %2235 = vmatprep.subr.bf16.mxu1 %v2756_v2  ;;  %v2959_v2 = vpack.c.bf16 %v189_v50, %v188_v36 }
  0x78   :  { %712 = vmatprep.mubr.f32.mxu1 %v621_v0  ;;  %v2988_v0 = vld [vmem:[%s3197_s1 + $0x8] sm:$0xff] }
  0x79   :  { %3282 = vst [vmem:[#allocation41_spill] sm:$0xff] %v2959_v2  ;;  %2169 = vmatpush3.bf16.msra.mxu0 %v2959_v2  ;;  %713 = vmatmul.mubr.f32.vlgmr.msra.gmra.mrb[4].mxu1 %v613_v40  ;;  %v630_v36 = vrot.slane %v2988_v0, %v2718_v19  ;;  %v3283_v40 = vmov 0.0|0.0  }
  0x7a   :  { %2203 = vmatprep.subr.bf16.mxu0 %v2660_v8  ;;  %2237 = vmatpush3.bf16.msra.mxu1 %v2762_v29 }
  0x7b   :  { %2239 = vmatprep.subr.bf16.mxu1 %v2768_v31  ;;  %v638_v50 = vcombine.high %v630_v36, %v630_v36 }
  0x7d   :  { %852 = vmatprep.mubr.f32.mxu1 %v638_v50  ;;  %v3016_v50 = vld [vmem:[%s3200_s4] ss:$0 sm:$0xff] }
  0x7e   :  { %2241 = vmatpush3.bf16.msra.mxu1 %v2774_v53 }
  0x7f   :  { %2243 = vmatprep.subr.bf16.mxu1 %v2780_v58 }
  0x82   :  { %2245 = vmatpush3.bf16.msra.mxu1 %v2786_v15 }
  0x83   :  { %2247 = vmatprep.subr.bf16.mxu1 %v2792_v20 }
  0x86   :  { %2249 = vmatpush3.bf16.msra.mxu1 %v2801_v60 }
  0x87   :  { %2251 = vmatprep.subr.bf16.mxu1 %v2810_v9 }
  0x8a   :  { %2253 = vmatpush3.bf16.msra.mxu1 %v2819_v37 }
  0x8b   :  { %2255 = vmatprep.subr.bf16.mxu1 %v2825_v46 }
  0x8e   :  { %2257 = vmatpush3.bf16.msra.mxu1 %v2831_v63 }
  0x8f   :  { %2259 = vmatprep.subr.bf16.mxu1 %v2837_v11 }
  0x92   :  { %2261 = vmatpush3.bf16.msra.mxu1 %v2843_v44 }
  0x93   :  { %2263 = vmatprep.subr.bf16.mxu1 %v2849_v30 }
  0x96   :  { %2265 = vmatpush3.bf16.msra.mxu1 %v2855_v41 }
  0x97   :  { %2298 = vmatprep.subr.bf16.mxu1 %v3283_v40 }
  0x99   :  { %853 = vmatmul.mubr.f32.vlgmr.msra.gmra.mrb[6].mxu1 %v630_v36 }
  0x9a   :  { %2300 = vmatpush3.bf16.msra.mxu1 %v2892_v62  ;;  %1980 = vmatprep.mubr.msk.f32.mxu1 %vm2589_vm0, %v3236_v61  ;;  %v606_v62 = vcombine.high %v2966_v52, %v2966_v52  ;;  %v3295_v52 = vld [vmem:[#allocation26_spill] sm:$0xff] }
  0x9b   :  { %2301 = vmatprep.subr.bf16.mxu1 %v3283_v40 }
  0x9c   :  { %v620_v11 = vrot.slane %v606_v62, %v2718_v19  ;;  %v3288_v62 = vld [vmem:[#allocation18_spill] sm:$0xff] }
  0x9e   :  { %2303 = vmatpush3.bf16.msra.mxu1 %v2898_v42  ;;  %v622_v37 = vcombine.high %v620_v11, %v620_v11 }
  0x9f   :  { %2304 = vmatprep.subr.bf16.mxu1 %v3283_v40 }
  0xa2   :  { %2306 = vmatpush3.bf16.msra.mxu1 %v2908_v47 }
  0xa3   :  { %2307 = vmatprep.subr.bf16.mxu1 %v3283_v40 }
  0xa6   :  { %2309 = vmatpush3.bf16.msra.mxu1 %v2918_v56 }
  0xa7   :  { %2310 = vmatprep.subr.bf16.mxu1 %v3283_v40 }
  0xaa   :  { %2312 = vmatpush3.bf16.msra.mxu1 %v2928_v24 }
  0xab   :  { %2313 = vmatprep.subr.bf16.mxu1 %v3283_v40 }
  0xae   :  { %2315 = vmatpush3.bf16.msra.mxu1 %v2938_v1 }
  0xaf   :  { %2316 = vmatprep.subr.bf16.mxu1 %v3283_v40 }
  0xb2   :  { %2318 = vmatpush3.bf16.msra.mxu1 %v2949_v18 }
  0xb3   :  { %2319 = vmatprep.subr.bf16.mxu1 %v3283_v40 }
  0xb6   :  { %2321 = vmatpush3.bf16.msra.mxu1 %v2959_v2 }
  0xb7   :  { %2355 = vmatprep.subr.bf16.mxu1 %v2660_v8 }
 0x10a   :  { %v1474_v36 = vpop.f32.mrb[0].mxu0 }
 0x10b   :  { %v1475_v61 = vpop.f32.mrb[1].mxu0 }
 0x10c   :  { %v1509_v24 = vpop.f32.mrb[0].mxu1  ;;  %v1476_v56 = vadd.f32 %v1475_v61, %v1474_v36  ;;  %v3310_v36 = vld [vmem:[#allocation36_spill] sm:$0xff] }
 0x10d   :  { %v1510_v1 = vpop.f32.mrb[1].mxu1 }
 0x10e   :  { %v1511_v47 = vadd.f32 %v1510_v1, %v1509_v24  ;;  %v310_v42 = vadd.f32 %v1476_v56, %v3016_v50  ;;  %v3291_v56 = vld [vmem:[#allocation21_spill] sm:$0xff]  ;;  %v3292_v24 = vld [vmem:[#allocation22_spill] sm:$0xff]  ;;  %v3293_v1 = vld [vmem:[#allocation23_spill] sm:$0xff] }
 0x110   :  { %v380_v18 = vadd.f32 %v1511_v47, %v310_v42  ;;  %v3289_v42 = vld [vmem:[#allocation19_spill] sm:$0xff]  ;;  %v3290_v47 = vld [vmem:[#allocation20_spill] sm:$0xff] }
 0x12a   :  { %v1544_v2 = vpop.f32.mrb[2].mxu0 }
 0x12b   :  { %v1545_v40 = vpop.f32.mrb[3].mxu0 }
 0x12c   :  { %v1579_v8 = vpop.f32.mrb[2].mxu1  ;;  %v1546_v41 = vadd.f32 %v1545_v40, %v1544_v2  ;;  %v623_v2 = vcombine.high %v2988_v0, %v2988_v0  ;;  %v3308_v0 = vmov 0.0   ;;  %v3309_v40 = vld [vmem:[#allocation35_spill] sm:$0xff] }
 0x12d   :  { %v1580_v30 = vpop.f32.mrb[3].mxu1 }
 0x12e   :  { %v1581_v44 = vadd.f32 %v1580_v30, %v1579_v8  ;;  %v450_v63 = vadd.f32 %v1546_v41, %v380_v18  ;;  %v3286_v30 = vld [vmem:[#allocation16_spill] sm:$0xff]  ;;  %v3287_v41 = vld [vmem:[#allocation17_spill] sm:$0xff] }
 0x12f   :  { %v3294_v18 = vld [vmem:[#allocation24_spill] sm:$0xff]  ;;  %v3311_v8 = vld [vmem:[#allocation37_spill] sm:$0xff] }
 0x130   :  { %v520_v46 = vadd.f32 %v1581_v44, %v450_v63  ;;  %v637_v63 = vrot.slane %v623_v2, %v2718_v19  ;;  %v3285_v44 = vld [vmem:[#allocation14_spill] sm:$0xff]  ;;  %v3112_v2 = vld [vmem:[%s3202_s6] ss:$0 sm:$0xff]  ;;  %s2591_s6 = smov [#allocation6]  }
 0x131   :  { %s1414_s21 = sshll.u32 %s2591_s6, 4  ;;  %s1415_s21 = int_to_ptr.vmem [resolvable:$true] %s1414_s21 }
 0x132   :  { %v523_v61 = vmax.f32 %v520_v46, 0.0  ;;  %v639_v46 = vcombine.high %v637_v63, %v637_v63  ;;  %s2512_s23 = scalar_lea.vmem %s1415_s21, 32  ;;  %p2517_p9 = scmp.lt.s32.totalorder %s1415_s21, %s1415_s21 }
 0x133   :  { %p2513_p8 = scmp.ne.s32.totalorder %s1415_s21, %s2512_s23  ;;  %p2518_p10 = scmp.lt.s32.totalorder %s2512_s23, %s2512_s23 }
 0x134   :  { %1946 = vmatmul.mubr.f32.vlgmr.msra.gmra.mrb[4].mxu0 %v523_v61  ;;  %v3312_v61 = vld [vmem:[#allocation38_spill] sm:$0xff] }
 0x135   :  { %2205 = vmatpush3.bf16.msra.mxu0 %v2663_v12  ;;  %782 = vmatprep.mubr.f32.mxu0 %v622_v37  ;;  %v3284_v37 = vld [vmem:[#allocation12_spill] sm:$0xff]  ;;  %p2519_p11 = por %p2518_p10, %p2517_p9 }
 0x136   :  { %2207 = vmatprep.subr.bf16.mxu0 %v2672_v21 }
 0x137   :  { %p2520_p12 = pnand %p2519_p11, %p2513_p8 }
 0x139   :  { %2209 = vmatpush3.bf16.msra.mxu0 %v2675_v25 }
 0x13a   :  { %2211 = vmatprep.subr.bf16.mxu0 %v2683_v34 }
 0x13d   :  { %2213 = vmatpush3.bf16.msra.mxu0 %v2687_v38 }
 0x13e   :  { %2215 = vmatprep.subr.bf16.mxu0 %v2692_v43 }
 0x141   :  { %2217 = vmatpush3.bf16.msra.mxu0 %v2699_v54 }
 0x142   :  { %2219 = vmatprep.subr.bf16.mxu0 %v2704_v59 }
 0x145   :  { %2221 = vmatpush3.bf16.msra.mxu0 %v2711_v5 }
 0x146   :  { %2223 = vmatprep.subr.bf16.mxu0 %v2716_v13 }
 0x149   :  { %2225 = vmatpush3.bf16.msra.mxu0 %v2725_v27 }
 0x14a   :  { %2227 = vmatprep.subr.bf16.mxu0 %v2733_v32 }
 0x14d   :  { %2229 = vmatpush3.bf16.msra.mxu0 %v2742_v48 }
 0x14e   :  { %2231 = vmatprep.subr.bf16.mxu0 %v3284_v37 }
 0x151   :  { %2233 = vmatpush3.bf16.msra.mxu0 %v3285_v44 }
 0x152   :  { %2267 = vmatprep.subr.bf16.mxu0 %v3286_v30 }
 0x154   :  { %783 = vmatmul.mubr.f32.vlgmr.msra.gmra.mrb[6].mxu0 %v620_v11  ;;  %v3296_v11 = vld [vmem:[#allocation28_spill] sm:$0xff] }
 0x155   :  { %2269 = vmatpush3.bf16.msra.mxu0 %v3287_v41  ;;  %922 = vmatprep.mubr.f32.mxu0 %v639_v46  ;;  %v3313_v46 = vld [vmem:[#allocation39_spill] sm:$0xff] }
 0x156   :  { %2271 = vmatprep.subr.bf16.mxu0 %v3288_v62 }
 0x159   :  { %2273 = vmatpush3.bf16.msra.mxu0 %v3289_v42 }
 0x15a   :  { %2275 = vmatprep.subr.bf16.mxu0 %v3290_v47 }
 0x15d   :  { %2277 = vmatpush3.bf16.msra.mxu0 %v3291_v56 }
 0x15e   :  { %2279 = vmatprep.subr.bf16.mxu0 %v3292_v24 }
 0x161   :  { %2281 = vmatpush3.bf16.msra.mxu0 %v3293_v1 }
 0x162   :  { %2283 = vmatprep.subr.bf16.mxu0 %v3294_v18 }
 0x165   :  { %2285 = vmatpush3.bf16.msra.mxu0 %v3295_v52 }
 0x166   :  { %2287 = vmatprep.subr.bf16.mxu0 %v3296_v11 }
 0x169   :  { %2289 = vmatpush3.bf16.msra.mxu0 %v2835_v57 }
 0x16a   :  { %2291 = vmatprep.subr.bf16.mxu0 %v2840_v35 }
 0x16d   :  { %2293 = vmatpush3.bf16.msra.mxu0 %v2847_v14 }
 0x16e   :  { %2295 = vmatprep.subr.bf16.mxu0 %v2852_v10 }
 0x171   :  { %2297 = vmatpush3.bf16.msra.mxu0 %v2859_v22 }
 0x172   :  { %2323 = vmatprep.subr.bf16.mxu0 %v2656_v3  ;;  %v1631_v3 = vpop.f32.mrb[4].mxu1 }
 0x174   :  { %923 = vmatmul.mubr.f32.vlgmr.msra.gmra.mrb[8].mxu0 %v637_v63 }
 0x175   :  { %2325 = vmatpush3.bf16.msra.mxu0 %v2658_v7  ;;  %v1632_v7 = vpop.f32.mrb[5].mxu1 }
 0x176   :  { %2327 = vmatprep.subr.bf16.mxu0 %v2667_v16  ;;  %v1633_v16 = vadd.f32 %v1632_v7, %v1631_v3 }
 0x179   :  { %2329 = vmatpush3.bf16.msra.mxu0 %v2669_v17  ;;  %v3297_v17 = vld [vmem:[#allocation13_spill] sm:$0xff] }
 0x17a   :  { %2331 = vmatprep.subr.bf16.mxu0 %v2677_v26  ;;  %v3298_v26 = vld [vmem:[#allocation15_spill] sm:$0xff] }
 0x17d   :  { %2333 = vmatpush3.bf16.msra.mxu0 %v2681_v33  ;;  %v1701_v33 = vpop.f32.mrb[6].mxu1 }
 0x17e   :  { %2335 = vmatprep.subr.bf16.mxu0 %v2689_v39  ;;  %v1702_v39 = vpop.f32.mrb[7].mxu1 }
 0x181   :  { %2337 = vmatpush3.bf16.msra.mxu0 %v2695_v51  ;;  %v1703_v51 = vadd.f32 %v1702_v39, %v1701_v33  ;;  %v715_v33 = vadd.f32 %v1633_v16, %v3016_v50 }
 0x182   :  { %2339 = vmatprep.subr.bf16.mxu0 %v2701_v55  ;;  %v1000_v55 = vld [vmem:[%s3198_s2] sm:$0xff] }
 0x185   :  { %2341 = vmatpush3.bf16.msra.mxu0 %v2707_v4  ;;  %v1011_v4 = vrot.slane %v1000_v55, %v2718_v19 }
 0x186   :  { %2343 = vmatprep.subr.bf16.mxu0 %v2713_v6 }
 0x187   :  { %v1019_v6 = vcombine.high %v1011_v4, %v1011_v4 }
 0x189   :  { %2345 = vmatpush3.bf16.msra.mxu0 %v2721_v23  ;;  %1110 = vmatprep.mubr.f32.mxu0 %v1019_v6  ;;  %v3299_v23 = vld [vmem:[#allocation25_spill] sm:$0xff] }
 0x18a   :  { %2347 = vmatprep.subr.bf16.mxu0 %v2727_v28  ;;  %v3300_v28 = vld [vmem:[#allocation27_spill] sm:$0xff] }
 0x18d   :  { %2349 = vmatpush3.bf16.msra.mxu0 %v2737_v45  ;;  %v3301_v45 = vld [vmem:[#allocation29_spill] sm:$0xff] }
 0x18e   :  { %2351 = vmatprep.subr.bf16.mxu0 %v2744_v49  ;;  %v3302_v49 = vld [vmem:[#allocation30_spill] sm:$0xff] }
 0x191   :  { %2353 = vmatpush3.bf16.msra.mxu0 %v3297_v17  ;;  %v3314_v17 = vld [vmem:[#allocation40_spill] sm:$0xff] }
 0x192   :  { %2387 = vmatprep.subr.bf16.mxu0 %v3298_v26  ;;  %v3315_v26 = vld [vmem:[#allocation41_spill] sm:$0xff] }
 0x194   :  { %1111 = vmatmul.mubr.f32.vlgmr.msra.gmra.mrb[10].mxu0 %v1011_v4 }
 0x195   :  { %2389 = vmatpush3.bf16.msra.mxu0 %v2762_v29  ;;  %v3303_v29 = vld [vmem:[#allocation31_spill] sm:$0xff] }
 0x196   :  { %2391 = vmatprep.subr.bf16.mxu0 %v2768_v31  ;;  %v1001_v31 = vld [vmem:[%s3198_s2 + $0x8] sm:$0xff] }
 0x199   :  { %2393 = vmatpush3.bf16.msra.mxu0 %v2774_v53  ;;  %v3304_v53 = vld [vmem:[#allocation32_spill] sm:$0xff] }
 0x19a   :  { %2395 = vmatprep.subr.bf16.mxu0 %v2780_v58  ;;  %v1028_v58 = vrot.slane %v1001_v31, %v2718_v19 }
 0x19d   :  { %2397 = vmatpush3.bf16.msra.mxu0 %v2786_v15  ;;  %v1036_v15 = vcombine.high %v1028_v58, %v1028_v58 }
 0x19e   :  { %2399 = vmatprep.subr.bf16.mxu0 %v2792_v20  ;;  %v3305_v20 = vld [vmem:[#allocation33_spill] sm:$0xff] }
 0x19f   :  { %1250 = vmatprep.mubr.f32.mxu0 %v1036_v15 }
 0x1a1   :  { %2401 = vmatpush3.bf16.msra.mxu0 %v2801_v60  ;;  %v3306_v60 = vmov 0.0|0.0  }
 0x1a2   :  { %2403 = vmatprep.subr.bf16.mxu0 %v2810_v9  ;;  %v3307_v9 = vld [vmem:[#allocation34_spill] sm:$0xff] }
 0x1a5   :  { %2405 = vmatpush3.bf16.msra.mxu0 %v3299_v23 }
 0x1a6   :  { %2407 = vmatprep.subr.bf16.mxu0 %v3300_v28 }
 0x1a9   :  { %2409 = vmatpush3.bf16.msra.mxu0 %v3301_v45  ;;  %v1004_v45 = vcombine.high %v1000_v55, %v1000_v55 }
 0x1aa   :  { %2411 = vmatprep.subr.bf16.mxu0 %v3302_v49 }
 0x1ad   :  { %2413 = vmatpush3.bf16.msra.mxu0 %v3303_v29 }
 0x1ae   :  { %2415 = vmatprep.subr.bf16.mxu0 %v3304_v53  ;;  %v1018_v53 = vrot.slane %v1004_v45, %v2718_v19 }
 0x1b1   :  { %2417 = vmatpush3.bf16.msra.mxu0 %v3305_v20  ;;  %v1020_v20 = vcombine.high %v1018_v53, %v1018_v53 }
 0x1b2   :  { %2450 = vmatprep.subr.bf16.mxu0 %v3306_v60 }
 0x1b4   :  { %1251 = vmatmul.mubr.f32.vlgmr.msra.gmra.mrb[12].mxu0 %v1028_v58 }
 0x1b5   :  { %2452 = vmatpush3.bf16.msra.mxu0 %v3307_v9  ;;  %2015 = vmatprep.mubr.msk.f32.mxu0 %vm2589_vm0, %v3308_v0 }
 0x1b6   :  { %2453 = vmatprep.subr.bf16.mxu0 %v3306_v60 }
 0x1b9   :  { %2455 = vmatpush3.bf16.msra.mxu0 %v3309_v40 }
 0x1ba   :  { %2456 = vmatprep.subr.bf16.mxu0 %v3306_v60 }
 0x1bd   :  { %2458 = vmatpush3.bf16.msra.mxu0 %v3310_v36 }
 0x1be   :  { %2459 = vmatprep.subr.bf16.mxu0 %v3306_v60 }
 0x1c1   :  { %2461 = vmatpush3.bf16.msra.mxu0 %v3311_v8 }
 0x1c2   :  { %2462 = vmatprep.subr.bf16.mxu0 %v3306_v60 }
 0x1c5   :  { %2464 = vmatpush3.bf16.msra.mxu0 %v3312_v61 }
 0x1c6   :  { %2465 = vmatprep.subr.bf16.mxu0 %v3306_v60 }
 0x1c9   :  { %2467 = vmatpush3.bf16.msra.mxu0 %v3313_v46 }
 0x1ca   :  { %2468 = vmatprep.subr.bf16.mxu0 %v3306_v60 }
 0x1cd   :  { %2470 = vmatpush3.bf16.msra.mxu0 %v3314_v17 }
 0x1ce   :  { %2471 = vmatprep.subr.bf16.mxu0 %v3306_v60 }
 0x1d1   :  { %2473 = vmatpush3.bf16.msra.mxu0 %v3315_v26 }
 0x207   :  { %v596_v63 = vpop.f32.mrb[4].mxu0 }
 0x208   :  { %v597_v3 = vadd.f32 %v3112_v2, %v596_v63  ;;  %v1947_v7 = vpop.f32.mrb[5].mxu0 }
 0x20a   :  { %601 = vst.msk [vmem:[#allocation5] sm:$0x3] %vm600_vm1, %v597_v3 }
 0x227   :  { %v1666_v39 = vpop.f32.mrb[6].mxu0 }
 0x228   :  { %v1667_v4 = vpop.f32.mrb[7].mxu0 }
 0x229   :  { %v1668_v6 = vadd.f32 %v1667_v4, %v1666_v39 }
 0x22b   :  { %v785_v23 = vadd.f32 %v1668_v6, %v715_v33 }
 0x22d   :  { %v855_v28 = vadd.f32 %v1703_v51, %v785_v23 }
 0x247   :  { %v1736_v49 = vpop.f32.mrb[8].mxu0 }
 0x248   :  { %v1737_v29 = vpop.f32.mrb[9].mxu0 }
 0x249   :  { %v1738_v58 = vadd.f32 %v1737_v29, %v1736_v49 }
 0x24b   :  { %v925_v15 = vadd.f32 %v1738_v58, %v855_v28 }
 0x24d   :  { %v928_v9 = vmax.f32 %v925_v15, 0.0 }
 0x24f   :  { %1981 = vmatmul.mubr.f32.vlgmr.msra.gmra.mrb[8].mxu1 %v928_v9 }
 0x250   :  { %2357 = vmatpush3.bf16.msra.mxu1 %v2663_v12  ;;  %1180 = vmatprep.mubr.f32.mxu1 %v1020_v20  ;;  %v1021_v12 = vcombine.high %v1001_v31, %v1001_v31 }
 0x251   :  { %2359 = vmatprep.subr.bf16.mxu1 %v2672_v21 }
 0x252   :  { %v1035_v21 = vrot.slane %v1021_v12, %v2718_v19 }
 0x254   :  { %2361 = vmatpush3.bf16.msra.mxu1 %v2675_v25  ;;  %v1037_v25 = vcombine.high %v1035_v21, %v1035_v21 }
 0x255   :  { %2363 = vmatprep.subr.bf16.mxu1 %v2683_v34 }
 0x258   :  { %2365 = vmatpush3.bf16.msra.mxu1 %v2687_v38 }
 0x259   :  { %2367 = vmatprep.subr.bf16.mxu1 %v2692_v43 }
 0x25c   :  { %2369 = vmatpush3.bf16.msra.mxu1 %v2699_v54 }
 0x25d   :  { %2371 = vmatprep.subr.bf16.mxu1 %v2704_v59 }
 0x260   :  { %2373 = vmatpush3.bf16.msra.mxu1 %v2711_v5 }
 0x261   :  { %2375 = vmatprep.subr.bf16.mxu1 %v2716_v13 }
 0x264   :  { %2377 = vmatpush3.bf16.msra.mxu1 %v2725_v27 }
 0x265   :  { %2379 = vmatprep.subr.bf16.mxu1 %v2733_v32 }
 0x267   :  { %v1788_v34 = vpop.f32.mrb[10].mxu0 }
 0x268   :  { %2381 = vmatpush3.bf16.msra.mxu1 %v2742_v48  ;;  %v1789_v38 = vpop.f32.mrb[11].mxu0 }
 0x269   :  { %2383 = vmatprep.subr.bf16.mxu1 %v3284_v37  ;;  %v1790_v43 = vadd.f32 %v1789_v38, %v1788_v34 }
 0x26b   :  { %v1113_v32 = vadd.f32 %v1790_v43, %v3016_v50 }
 0x26c   :  { %2385 = vmatpush3.bf16.msra.mxu1 %v3285_v44 }
 0x26d   :  { %2419 = vmatprep.subr.bf16.mxu1 %v3286_v30 }
 0x26f   :  { %1181 = vmatmul.mubr.f32.vlgmr.msra.gmra.mrb[10].mxu1 %v1018_v53 }
 0x270   :  { %2421 = vmatpush3.bf16.msra.mxu1 %v3287_v41  ;;  %1320 = vmatprep.mubr.f32.mxu1 %v1037_v25 }
 0x271   :  { %2423 = vmatprep.subr.bf16.mxu1 %v3288_v62 }
 0x274   :  { %2425 = vmatpush3.bf16.msra.mxu1 %v3289_v42 }
 0x275   :  { %2427 = vmatprep.subr.bf16.mxu1 %v3290_v47 }
 0x278   :  { %2429 = vmatpush3.bf16.msra.mxu1 %v3291_v56 }
 0x279   :  { %2431 = vmatprep.subr.bf16.mxu1 %v3292_v24 }
 0x27c   :  { %2433 = vmatpush3.bf16.msra.mxu1 %v3293_v1 }
 0x27d   :  { %2435 = vmatprep.subr.bf16.mxu1 %v3294_v18 }
 0x280   :  { %2437 = vmatpush3.bf16.msra.mxu1 %v3295_v52 }
 0x281   :  { %2439 = vmatprep.subr.bf16.mxu1 %v3296_v11 }
 0x284   :  { %2441 = vmatpush3.bf16.msra.mxu1 %v2835_v57 }
 0x285   :  { %2443 = vmatprep.subr.bf16.mxu1 %v2840_v35 }
 0x287   :  { %v1858_v54 = vpop.f32.mrb[12].mxu0 }
 0x288   :  { %2445 = vmatpush3.bf16.msra.mxu1 %v2847_v14  ;;  %v1859_v59 = vpop.f32.mrb[13].mxu0 }
 0x289   :  { %2447 = vmatprep.subr.bf16.mxu1 %v2852_v10  ;;  %v1860_v5 = vadd.f32 %v1859_v59, %v1858_v54 }
 0x28c   :  { %2449 = vmatpush3.bf16.msra.mxu1 %v2859_v22 }
 0x28f   :  { %1321 = vmatmul.mubr.f32.vlgmr.msra.gmra.mrb[12].mxu1 %v1035_v21 }
 0x322   :  { %v995_v13 = vpop.f32.mrb[8].mxu1 }
 0x323   :  { %v996_v19 = vadd.f32 %v3112_v2, %v995_v13  ;;  %v1982_v27 = vpop.f32.mrb[9].mxu1 }
 0x325   :  { %999 = vst.msk [vmem:[#allocation6] sm:$0x3] %vm600_vm1, %v996_v19 }
 0x342   :  { %v1823_v48 = vpop.f32.mrb[10].mxu1 }
 0x343   :  { %v1824_v57 = vpop.f32.mrb[11].mxu1 }
 0x344   :  { %v1825_v35 = vadd.f32 %v1824_v57, %v1823_v48 }
 0x346   :  { %v1183_v14 = vadd.f32 %v1825_v35, %v1113_v32 }
 0x348   :  { %v1253_v10 = vadd.f32 %v1860_v5, %v1183_v14 }
 0x362   :  { %v1893_v22 = vpop.f32.mrb[12].mxu1 }
 0x363   :  { %v1894_v37 = vpop.f32.mrb[13].mxu1 }
 0x364   :  { %v1895_v44 = vadd.f32 %v1894_v37, %v1893_v22 }
 0x366   :  { %v1323_v30 = vadd.f32 %v1895_v44, %v1253_v10 }
 0x368   :  { %v1326_v41 = vmax.f32 %v1323_v30, 0.0 }
 0x36a   :  { %2016 = vmatmul.mubr.f32.vlgmr.msra.gmra.mrb[14].mxu0 %v1326_v41 }
 0x36b   :  { %2523 = shalt.err (!%p2520_p12)
}
 0x36c   :  { %s2524_s0 = scalar_lea.hbm %s3204_s8, 32 }
 0x36d   :  { %p2525_p13 = scmp.ne.s32.totalorder %s3204_s8, %s2524_s0  ;;  %p2528_p0 = scmp.lt.u32.totalorder %s2524_s0, %s3204_s8 }
 0x36f   :  { %p2530_p1 = pnand %p2528_p0, %p2525_p13 }
 0x371   :  { %2533 = shalt.err (!%p2530_p1)
}
 0x372   :  { %1417 = dma.vmem_to_hbm [thread:$0]  %s1415_s21, 32, %s3204_s8, [#allocation7]  }
 0x373   :  { %s2534_s11 = scalar_lea.vmem %s1405_s3, 32  ;;  %p2539_p3 = scmp.lt.s32.totalorder %s1405_s3, %s1405_s3 }
 0x374   :  { %p2535_p2 = scmp.ne.s32.totalorder %s1405_s3, %s2534_s11  ;;  %p2540_p4 = scmp.lt.s32.totalorder %s2534_s11, %s2534_s11 }
 0x376   :  { %p2541_p5 = por %p2540_p4, %p2539_p3 }
 0x378   :  { %p2542_p6 = pnand %p2541_p5, %p2535_p2 }
 0x37a   :  { %2545 = shalt.err (!%p2542_p6)
}
 0x37b   :  { %s2546_s14 = scalar_lea.hbm %s3203_s7, 32 }
 0x37c   :  { %p2547_p7 = scmp.ne.s32.totalorder %s3203_s7, %s2546_s14  ;;  %p2550_p8 = scmp.lt.u32.totalorder %s2546_s14, %s3203_s7 }
 0x37e   :  { %p2552_p9 = pnand %p2550_p8, %p2547_p7 }
 0x380   :  { %2555 = shalt.err (!%p2552_p9)
}
 0x381   :  { %1407 = dma.vmem_to_hbm [thread:$0]  %s1405_s3, 32, %s3203_s7, [#allocation4]  }
 0x382   :  { %s2593_s17 = smov [#allocation8]  }
 0x383   :  { %s1424_s18 = sshll.u32 %s2593_s17, 4  ;;  %s1425_s18 = int_to_ptr.vmem [resolvable:$true] %s1424_s18 }
 0x384   :  { %s2556_s19 = scalar_lea.vmem %s1425_s18, 32  ;;  %p2561_p11 = scmp.lt.s32.totalorder %s1425_s18, %s1425_s18 }
 0x385   :  { %p2557_p10 = scmp.ne.s32.totalorder %s1425_s18, %s2556_s19  ;;  %p2562_p12 = scmp.lt.s32.totalorder %s2556_s19, %s2556_s19 }
 0x387   :  { %p2563_p13 = por %p2562_p12, %p2561_p11 }
 0x389   :  { %p2564_p0 = pnand %p2563_p13, %p2557_p10 }
 0x43d   :  { %v1393_v50 = vpop.f32.mrb[14].mxu0 }
 0x43e   :  { %v1394_v62 = vadd.f32 %v3112_v2, %v1393_v50  ;;  %v2017_v42 = vpop.f32.mrb[15].mxu0 }
 0x440   :  { %1397 = vst.msk [vmem:[#allocation8] sm:$0x3] %vm600_vm1, %v1394_v62 }
 0x441   :  { %2567 = shalt.err (!%p2564_p0)
}
 0x442   :  { %s2568_s7 = scalar_lea.hbm %s3205_s9, 32 }
 0x443   :  { %p2569_p1 = scmp.ne.s32.totalorder %s3205_s9, %s2568_s7  ;;  %p2572_p2 = scmp.lt.u32.totalorder %s2568_s7, %s3205_s9 }
 0x445   :  { %p2574_p3 = pnand %p2572_p2, %p2569_p1 }
 0x447   :  { %2577 = shalt.err (!%p2574_p3)
}
 0x448   :  { %1427 = dma.vmem_to_hbm [thread:$0]  %s1425_s18, 32, %s3205_s9, [#allocation7]  }
 0x449   :  { %2580 = dma.done.wait [#allocation4], 32  }
 0x44a   :  { %2581 = vsyncadd [#allocation4], 4294967264 }
 0x44b   :  { %2582 = dma.done.wait [#allocation7], 64  }
 0x44c   :  { %2583 = vsyncadd [#allocation7], 4294967232 }
 0x44d   :  { %1437 = vsyncpa [#allocation3], 1 }
 0x44e   :  { %1438 = vsyncpa [#allocation4], 1 }
 0x44f   :  { %1439 = vsyncpa [#allocation7], 1 }

</bundles_post_ra>
